<compile_context>
chip_gen: v5e
topology: v5e:2x2
jax: 0.10.0
libtpu: 0.0.40
codegen_flags: <defaults>
</compile_context>

<pallas_src>
import math

import jax
import jax.numpy as jnp
from jax.experimental import pallas as pl
from jax.experimental.pallas import tpu as pltpu


# ---------------------------------------------------------------------------
# Glue: window_partition (replicate pad + reshape/permute), pure JAX.
# ---------------------------------------------------------------------------
def window_partition(x, window_size):
    """(N, C, T, J, E) -> (N, C, Tw, Jw*Ew, TokenNum), replicate padded."""
    N, C, T, J, E = x.shape
    Tw, Jw, Ew = window_size
    pT = (Tw - T % Tw) % Tw
    pJ = (Jw - J % Jw) % Jw
    pE = (Ew - E % Ew) % Ew
    x = jnp.pad(x, ((0, 0), (0, 0), (0, pT), (0, pJ), (0, pE)), mode="edge")
    N, C, T, J, E = x.shape
    x = x.reshape(N, C, Tw, T // Tw, Jw, J // Jw, Ew, E // Ew)
    x = jnp.transpose(x, (0, 1, 2, 4, 6, 3, 5, 7))
    x = x.reshape(N, C, Tw, Jw * Ew, (T // Tw) * (J // Jw) * (E // Ew))
    return x


# ---------------------------------------------------------------------------
# Single fused kernel: embed (conv1x1x1 + BN(eval) + LeakyReLU) + per-batch
# spatial mean + both classification heads.
# ---------------------------------------------------------------------------
def fused_forward_kernel(x_ref, w_ref, b_ref, pool_ref, wh_ref, bh_ref, o_ref):
    # x_ref:    (C_in, N*S)   input, channels on sublanes, batch*spatial on lanes
    # w_ref:    (C_out, C_in) conv weight with BatchNorm scale folded in
    # b_ref:    (C_out, 1)    conv bias + BatchNorm shift folded in
    # pool_ref: (N*S, N)      per-batch mean matrix (1/S on each batch segment)
    # wh_ref:   (2K, C_out)   fc & align_fc weights, concatenated + transposed
    # bh_ref:   (2K, 1)       fc & align_fc biases
    # o_ref:    (2K, N)       fused logits (transposed; split in the wrapper)
    x = x_ref[...]
    w = w_ref[...]
    c_in = x_ref.shape[0]

    # Embed "conv": K = C_in is tiny, so do C_in broadcasted VPU MACs instead
    # of a degenerate MXU contraction.  Loop is unrolled at trace time.
    y = w[:, 0:1] * x[0:1, :]
    for k in range(1, c_in):
        y = y + w[:, k:k + 1] * x[k:k + 1, :]
    y = y + b_ref[...]                       # folded conv bias + BN shift
    y = jnp.where(y > 0, y, 0.1 * y)         # LeakyReLU(0.1)

    # Per-batch spatial mean as a segment-matrix matmul on the idle MXU.
    pooled = jnp.dot(y, pool_ref[...],
                     preferred_element_type=jnp.float32)          # (C_out, N)

    # Both heads fused: logits^T = W_heads^T @ pooled + b_heads.
    o_ref[...] = jnp.dot(wh_ref[...], pooled,
                         preferred_element_type=jnp.float32) + bh_ref[...]


# ---------------------------------------------------------------------------
# Full forward (inference branch of ModelAlign.forward)
# ---------------------------------------------------------------------------
def model_align_forward(params, x, window_size):
    N, C_in = x.shape[0], x.shape[1]
    xw = window_partition(x, window_size)            # (N, C, Tw, Jw*Ew, Tok)
    S = xw.shape[2] * xw.shape[3] * xw.shape[4]
    # Fold batch into the lane axis -> lane-dense (C_in, N*S) slab.
    x2d = jnp.transpose(xw.reshape(N, C_in, S), (1, 0, 2)).reshape(C_in, N * S)

    # Fold BatchNorm3d (eval) into the 1x1x1 conv:
    #   y = scale * (W x + b) + shift  ->  (scale*W) x + (scale*b + shift)
    w_eff = params["bn_scale"] * params["conv_w"]                       # (C_out, C_in)
    b_eff = params["bn_scale"] * params["conv_b"] + params["bn_shift"]  # (C_out, 1)

    # Per-batch spatial-mean matrix (N*S -> N): 1/S on each batch's segment.
    seg = jnp.repeat(jnp.arange(N), S)
    pool_mat = (seg[:, None] == jnp.arange(N)[None, :]).astype(jnp.float32) / S

    # Concatenate fc and align_fc into one head (transposed for (2K,Cout)@(Cout,N)).
    wh_t = jnp.concatenate([params["fc_w"], params["align_fc_w"]], axis=1).T  # (2K, C_out)
    bh_t = jnp.concatenate([params["fc_b"], params["align_fc_b"]], axis=1).T  # (2K, 1)
    K2 = wh_t.shape[0]

    logits_t = pl.pallas_call(
        fused_forward_kernel,
        out_shape=jax.ShapeDtypeStruct((K2, N), jnp.float32),
        in_specs=[pl.BlockSpec(memory_space=pltpu.MemorySpace.VMEM)] * 6,
        out_specs=pl.BlockSpec(memory_space=pltpu.MemorySpace.VMEM),
    )(x2d, w_eff, b_eff, pool_mat, wh_t, bh_t)

    logits_all = logits_t.T                           # (N, 2K)
    K = K2 // 2
    # Dropout is an eval-mode no-op; TSA blocks are identity (see TODO above).
    return logits_all[:, :K], logits_all[:, K:]


# ---------------------------------------------------------------------------
# Pure-JAX reference of the same inference path (for a sanity check).
# ---------------------------------------------------------------------------
def reference_forward(params, x, window_size):
    xw = window_partition(x, window_size)
    N = xw.shape[0]
    y = jnp.einsum("oc,nctjk->notjk", params["conv_w"], xw)
    y = y + params["conv_b"].reshape(1, -1, 1, 1, 1)
    y = y * params["bn_scale"].reshape(1, -1, 1, 1, 1) \
          + params["bn_shift"].reshape(1, -1, 1, 1, 1)
    y = jnp.where(y > 0, y, 0.1 * y)
    pooled = y.reshape(N, y.shape[1], -1).mean(axis=2)            # (N, C_out)
    logits = pooled @ params["fc_w"] + params["fc_b"]
    align_logits = pooled @ params["align_fc_w"] + params["align_fc_b"]
    return logits, align_logits


# ---------------------------------------------------------------------------
if __name__ == "__main__":
    key = jax.random.PRNGKey(0)
    k_x, k_cw, k_cb, k_fc, k_afc = jax.random.split(key, 5)

    # Small shapes consistent with the module: x is (N, num_channels, T, J, E)
    N, C_in, T, J, E = 2, 3, 10, 7, 2
    window_size = (4, 4, 2)
    C_embed = 32            # config[0][0] == config[-1][1] == align channels
    num_classes = 10

    x = jax.random.normal(k_x, (N, C_in, T, J, E), dtype=jnp.float32)

    # Conv3d(num_channels, in_channels, kernel_size=1) parameters
    conv_w = jax.random.normal(k_cw, (C_embed, C_in), dtype=jnp.float32) * 0.3
    conv_b = jax.random.normal(k_cb, (C_embed, 1), dtype=jnp.float32) * 0.05

    # BatchNorm3d eval-mode affine: y = gamma*(x - mean)/sqrt(var+eps) + beta
    gamma = 1.0 + 0.01 * jnp.arange(C_embed, dtype=jnp.float32)
    beta = 0.01 * jnp.arange(C_embed, dtype=jnp.float32)
    run_mean = jnp.zeros((C_embed,), jnp.float32)
    run_var = jnp.ones((C_embed,), jnp.float32)
    eps = 1e-5
    inv_std = gamma / jnp.sqrt(run_var + eps)
    bn_scale = inv_std.reshape(C_embed, 1)
    bn_shift = (beta - run_mean * inv_std).reshape(C_embed, 1)

    # fc / align_fc: xavier_normal_ weights, zero bias (fc_init)
    def xavier_normal(k, fan_in, fan_out):
        std = math.sqrt(2.0 / (fan_in + fan_out))
        return jax.random.normal(k, (fan_in, fan_out), jnp.float32) * std

    fc_w = xavier_normal(k_fc, C_embed, num_classes)
    fc_b = jnp.zeros((1, num_classes), jnp.float32)
    align_fc_w = xavier_normal(k_afc, C_embed, num_classes)
    align_fc_b = jnp.zeros((1, num_classes), jnp.float32)

    params = dict(conv_w=conv_w, conv_b=conv_b,
                  bn_scale=bn_scale, bn_shift=bn_shift,
                  fc_w=fc_w, fc_b=fc_b,
                  align_fc_w=align_fc_w, align_fc_b=align_fc_b)

    logits, align_logits = model_align_forward(params, x, window_size)
    jax.block_until_ready((logits, align_logits))

    assert logits.shape == (N, num_classes)
    assert align_logits.shape == (N, num_classes)

    ref_logits, ref_align = reference_forward(params, x, window_size)
    assert bool(jnp.allclose(logits, ref_logits, rtol=1e-2, atol=1e-2))
    assert bool(jnp.allclose(align_logits, ref_align, rtol=1e-2, atol=1e-2))

    print("KERNEL_OK")
</pallas_src>

<mosaic_0001>
module attributes {stable_mosaic.version = 11 : i64} {
  func.func @fused_forward_kernel(%arg0: memref<3x384xf32, #tpu.memory_space<vmem>>, %arg1: memref<32x3xf32, #tpu.memory_space<vmem>>, %arg2: memref<32x1xf32, #tpu.memory_space<vmem>>, %arg3: memref<384x2xf32, #tpu.memory_space<vmem>>, %arg4: memref<20x32xf32, #tpu.memory_space<vmem>>, %arg5: memref<20x1xf32, #tpu.memory_space<vmem>>, %arg6: memref<20x2xf32, #tpu.memory_space<vmem>>) attributes {dimension_semantics = [], scalar_prefetch = 0 : i64, scratch_operands = 0 : i64, tpu.core_type = #tpu.core_type<tc>} {
    %c0 = arith.constant 0 : index
    %c0_0 = arith.constant 0 : index
    %0 = vector.load %arg0[%c0, %c0_0] : memref<3x384xf32, #tpu.memory_space<vmem>>, vector<3x384xf32>
    %c0_1 = arith.constant 0 : index
    %c0_2 = arith.constant 0 : index
    %1 = vector.load %arg1[%c0_1, %c0_2] : memref<32x3xf32, #tpu.memory_space<vmem>>, vector<32x3xf32>
    %2 = vector.extract_strided_slice %1 {offsets = [0, 0], sizes = [32, 1], strides = [1, 1]} : vector<32x3xf32> to vector<32x1xf32>
    %3 = vector.extract_strided_slice %0 {offsets = [0, 0], sizes = [1, 384], strides = [1, 1]} : vector<3x384xf32> to vector<1x384xf32>
    %4 = vector.broadcast %2 : vector<32x1xf32> to vector<32x384xf32>
    %5 = vector.broadcast %3 : vector<1x384xf32> to vector<32x384xf32>
    %6 = arith.mulf %4, %5 : vector<32x384xf32>
    %7 = vector.extract_strided_slice %1 {offsets = [0, 1], sizes = [32, 1], strides = [1, 1]} : vector<32x3xf32> to vector<32x1xf32>
    %8 = vector.extract_strided_slice %0 {offsets = [1, 0], sizes = [1, 384], strides = [1, 1]} : vector<3x384xf32> to vector<1x384xf32>
    %9 = vector.broadcast %7 : vector<32x1xf32> to vector<32x384xf32>
    %10 = vector.broadcast %8 : vector<1x384xf32> to vector<32x384xf32>
    %11 = arith.mulf %9, %10 : vector<32x384xf32>
    %12 = arith.addf %6, %11 : vector<32x384xf32>
    %13 = vector.extract_strided_slice %1 {offsets = [0, 2], sizes = [32, 1], strides = [1, 1]} : vector<32x3xf32> to vector<32x1xf32>
    %14 = vector.extract_strided_slice %0 {offsets = [2, 0], sizes = [1, 384], strides = [1, 1]} : vector<3x384xf32> to vector<1x384xf32>
    %15 = vector.broadcast %13 : vector<32x1xf32> to vector<32x384xf32>
    %16 = vector.broadcast %14 : vector<1x384xf32> to vector<32x384xf32>
    %17 = arith.mulf %15, %16 : vector<32x384xf32>
    %18 = arith.addf %12, %17 : vector<32x384xf32>
    %c0_3 = arith.constant 0 : index
    %c0_4 = arith.constant 0 : index
    %19 = vector.load %arg2[%c0_3, %c0_4] : memref<32x1xf32, #tpu.memory_space<vmem>>, vector<32x1xf32>
    %20 = vector.broadcast %19 : vector<32x1xf32> to vector<32x384xf32>
    %21 = arith.addf %18, %20 : vector<32x384xf32>
    %cst = arith.constant 0.000000e+00 : f32
    %22 = vector.broadcast %cst : f32 to vector<32x384xf32>
    %23 = arith.cmpf ogt, %21, %22 : vector<32x384xf32>
    %cst_5 = arith.constant 1.000000e-01 : f32
    %24 = vector.broadcast %cst_5 : f32 to vector<32x384xf32>
    %25 = arith.mulf %24, %21 : vector<32x384xf32>
    %26 = arith.select %23, %21, %25 : vector<32x384xi1>, vector<32x384xf32>
    %c0_6 = arith.constant 0 : index
    %c0_7 = arith.constant 0 : index
    %27 = vector.load %arg3[%c0_6, %c0_7] : memref<384x2xf32, #tpu.memory_space<vmem>>, vector<384x2xf32>
    %cst_8 = arith.constant dense<0.000000e+00> : vector<32x2xf32>
    %28 = tpu.matmul %26, %27, %cst_8 {dimension_numbers = #tpu.dot_dimension_numbers<[1], [0], [0], [1], [0, 0, 1, 1], [], []>} : vector<32x384xf32>, vector<384x2xf32>, vector<32x2xf32> -> vector<32x2xf32>
    %c0_9 = arith.constant 0 : index
    %c0_10 = arith.constant 0 : index
    %29 = vector.load %arg4[%c0_9, %c0_10] : memref<20x32xf32, #tpu.memory_space<vmem>>, vector<20x32xf32>
    %cst_11 = arith.constant dense<0.000000e+00> : vector<20x2xf32>
    %30 = tpu.matmul %29, %28, %cst_11 {dimension_numbers = #tpu.dot_dimension_numbers<[1], [0], [0], [1], [0, 0, 1, 1], [], []>} : vector<20x32xf32>, vector<32x2xf32>, vector<20x2xf32> -> vector<20x2xf32>
    %c0_12 = arith.constant 0 : index
    %c0_13 = arith.constant 0 : index
    %31 = vector.load %arg5[%c0_12, %c0_13] : memref<20x1xf32, #tpu.memory_space<vmem>>, vector<20x1xf32>
    %32 = vector.broadcast %31 : vector<20x1xf32> to vector<20x2xf32>
    %33 = arith.addf %30, %32 : vector<20x2xf32>
    %c0_14 = arith.constant 0 : index
    %c0_15 = arith.constant 0 : index
    %34 = vector.load %arg6[%c0_14, %c0_15] : memref<20x2xf32, #tpu.memory_space<vmem>>, vector<20x2xf32>
    tpu.vector_store %arg6[%c0_14, %c0_15], %33 {strides = array<i32>} : memref<20x2xf32, #tpu.memory_space<vmem>>, vector<20x2xf32>,
    return
  }
}

</mosaic_0001>

<bundles_post_ra>
// kernel: tpu_custom_call.1
= control target key start
LH: loop header
LB: loop body
LE: loop exit
PB: predicated region body
PF: predicated region fallthrough
CT: control target
= control target key end

     0   :  { %v465_v0 = vmov 2   ;;  %v466_v1 = vmov 1   ;;  %v467_v4 = vmov 0   ;;  %vm398_vm12 = vcmask 261120   ;;  %s758_s1 = inlined_call_operand.vmem [shape: f32[32,3], index: 1, kind: input, shape index: {}]   ;;  %s759_s2 = inlined_call_operand.vmem [shape: f32[32,1], index: 2, kind: input, shape index: {}]   ;;  %s760_s3 = inlined_call_operand.vmem [shape: f32[384,2], index: 3, kind: input, shape index: {}]   ;;  %s761_s5 = inlined_call_operand.vmem [shape: f32[20,1], index: 5, kind: input, shape index: {}]   ;;  %s762_s0 = inlined_call_operand.vmem [shape: f32[3,384], index: 0, kind: input, shape index: {}]   ;;  %s763_s4 = inlined_call_operand.vmem [shape: f32[20,32], index: 4, kind: input, shape index: {}]   ;;  %s764_s6 = inlined_call_operand.vmem [shape: f32[20,2], index: 6, kind: output, shape index: {}]  }
   0x1   :  { %451 = vset.pattern.permute.xlu1 %v465_v0  ;;  %449 = vset.pattern.permute.xlu0 %v466_v1  ;;  %v25_v2 = vld [vmem:[%s758_s1] sm:$0xff]  ;;  %v26_v3 = vld [vmem:[%s758_s1 + $0x8] sm:$0xff]  ;;  %v27_v6 = vld [vmem:[%s758_s1 + $0x10] sm:$0xff]  ;;  %vm434_vm13 = vcmask 15360   ;;  %vm437_vm14 = vcmask 11264  }
   0x2   :  { %122 = vperm.xlu1 %451, %v25_v2   ;;  %73 = vperm.xlu0 %449, %v25_v2   ;;  %v170_v5 = vld [vmem:[%s759_s2] sm:$0xff]  ;;  %v171_v7 = vld [vmem:[%s759_s2 + $0x8] sm:$0xff]  ;;  %v257_v8 = vld [vmem:[%s760_s3 + $0x78] sm:$0xff] }
   0x3   :  { %453 = vset.pattern.permute.xlu2 %v467_v4  ;;  %v273_v9 = vld [vmem:[%s760_s3 + $0xf8] sm:$0xff]  ;;  %290 = vmatpush.msra.mxu0 %v257_v8  ;;  %v256_v12 = vld [vmem:[%s760_s3 + $0x70] sm:$0xff]  ;;  %v381_v17 = vld [vmem:[%s761_s5 + $0x8] sm:$0xff] }
   0x4   :  { %36 = vperm.xlu2 %453, %v26_v3   ;;  %v289_v10 = vld [vmem:[%s760_s3 + $0x178] sm:$0xff]  ;;  %319 = vmatpush.msra.mxu1 %v273_v9  ;;  %v272_v13 = vld [vmem:[%s760_s3 + $0xf0] sm:$0xff]  ;;  %v255_v18 = vld [vmem:[%s760_s3 + $0x68] sm:$0xff] }
   0x5   :  { %v28_v11 = vld [vmem:[%s758_s1 + $0x18] sm:$0xff]  ;;  %348 = vmatpush.msra.mxu2 %v289_v10  ;;  %291 = vmatpush.msra.mxu0 %v256_v12  ;;  %v288_v14 = vld [vmem:[%s760_s3 + $0x170] sm:$0xff]  ;;  %v271_v19 = vld [vmem:[%s760_s3 + $0xe8] sm:$0xff] }
   0x6   :  { %320 = vmatpush.msra.mxu1 %v272_v13  ;;  %v172_v15 = vld [vmem:[%s759_s2 + $0x10] sm:$0xff]  ;;  %v173_v16 = vld [vmem:[%s759_s2 + $0x18] sm:$0xff]  ;;  %v287_v20 = vld [vmem:[%s760_s3 + $0x168] sm:$0xff] }
   0x7   :  { %349 = vmatpush.msra.mxu2 %v288_v14  ;;  %292 = vmatpush.msra.mxu0 %v255_v18  ;;  %v254_v21 = vld [vmem:[%s760_s3 + $0x60] sm:$0xff]  ;;  %v253_v24 = vld [vmem:[%s760_s3 + $0x58] sm:$0xff]  ;;  %v252_v27 = vld [vmem:[%s760_s3 + $0x50] sm:$0xff] }
   0x8   :  { %321 = vmatpush.msra.mxu1 %v271_v19  ;;  %v270_v22 = vld [vmem:[%s760_s3 + $0xe0] sm:$0xff]  ;;  %v269_v25 = vld [vmem:[%s760_s3 + $0xd8] sm:$0xff]  ;;  %v268_v28 = vld [vmem:[%s760_s3 + $0xd0] sm:$0xff] }
   0x9   :  { %v286_v23 = vld [vmem:[%s760_s3 + $0x160] sm:$0xff]  ;;  %350 = vmatpush.msra.mxu2 %v287_v20  ;;  %293 = vmatpush.msra.mxu0 %v254_v21  ;;  %v285_v26 = vld [vmem:[%s760_s3 + $0x158] sm:$0xff]  ;;  %v284_v29 = vld [vmem:[%s760_s3 + $0x150] sm:$0xff] }
   0xa   :  { %452 = vset.pattern.permute.xlu1 %v467_v4  ;;  %450 = vset.pattern.permute.xlu0 %v467_v4  ;;  %v251_v30 = vld [vmem:[%s760_s3 + $0x48] sm:$0xff]  ;;  %v250_v33 = vld [vmem:[%s760_s3 + $0x40] sm:$0xff]  ;;  %v249_v36 = vld [vmem:[%s760_s3 + $0x38] sm:$0xff] }
   0xb   :  { %176 = vperm.xlu1 %452, %v170_v5   ;;  %31 = vperm.xlu0 %450, %v25_v2   ;;  %v267_v31 = vld [vmem:[%s760_s3 + $0xc8] sm:$0xff]  ;;  %v266_v34 = vld [vmem:[%s760_s3 + $0xc0] sm:$0xff]  ;;  %v265_v37 = vld [vmem:[%s760_s3 + $0xb8] sm:$0xff] }
   0xc   :  { %454 = vset.pattern.permute.xlu2 %v466_v1  ;;  %322 = vmatpush.msra.mxu1 %v270_v22  ;;  %v283_v32 = vld [vmem:[%s760_s3 + $0x148] sm:$0xff]  ;;  %v282_v35 = vld [vmem:[%s760_s3 + $0x140] sm:$0xff]  ;;  %v281_v38 = vld [vmem:[%s760_s3 + $0x138] sm:$0xff] }
   0xd   :  { %77 = vperm.xlu2 %454, %v26_v3   ;;  %351 = vmatpush.msra.mxu2 %v286_v23  ;;  %v248_v39 = vld [vmem:[%s760_s3 + $0x30] sm:$0xff]  ;;  %v247_v42 = vld [vmem:[%s760_s3 + $0x28] sm:$0xff]  ;;  %v246_v45 = vld [vmem:[%s760_s3 + $0x20] sm:$0xff] }
   0xe   :  { %294 = vmatpush.msra.mxu0 %v253_v24  ;;  %323 = vmatpush.msra.mxu1 %v269_v25  ;;  %v264_v40 = vld [vmem:[%s760_s3 + $0xb0] sm:$0xff]  ;;  %v263_v43 = vld [vmem:[%s760_s3 + $0xa8] sm:$0xff]  ;;  %v262_v46 = vld [vmem:[%s760_s3 + $0xa0] sm:$0xff] }
   0xf   :  { %352 = vmatpush.msra.mxu2 %v285_v26  ;;  %v280_v41 = vld [vmem:[%s760_s3 + $0x130] sm:$0xff]  ;;  %v279_v44 = vld [vmem:[%s760_s3 + $0x128] sm:$0xff]  ;;  %v278_v47 = vld [vmem:[%s760_s3 + $0x120] sm:$0xff] }
  0x10   :  { %295 = vmatpush.msra.mxu0 %v252_v27  ;;  %324 = vmatpush.msra.mxu1 %v268_v28  ;;  %v245_v48 = vld [vmem:[%s760_s3 + $0x18] sm:$0xff]  ;;  %v244_v51 = vld [vmem:[%s760_s3 + $0x10] sm:$0xff]  ;;  %v243_v54 = vld [vmem:[%s760_s3 + $0x8] sm:$0xff] }
  0x11   :  { %353 = vmatpush.msra.mxu2 %v284_v29  ;;  %v261_v49 = vld [vmem:[%s760_s3 + $0x98] sm:$0xff]  ;;  %v260_v52 = vld [vmem:[%s760_s3 + $0x90] sm:$0xff]  ;;  %v259_v55 = vld [vmem:[%s760_s3 + $0x88] sm:$0xff] }
  0x12   :  { %296 = vmatpush.msra.mxu0 %v251_v30  ;;  %325 = vmatpush.msra.mxu1 %v267_v31  ;;  %v277_v50 = vld [vmem:[%s760_s3 + $0x118] sm:$0xff]  ;;  %v276_v53 = vld [vmem:[%s760_s3 + $0x110] sm:$0xff]  ;;  %v275_v56 = vld [vmem:[%s760_s3 + $0x108] sm:$0xff] }
  0x13   :  { %455 = vset.pattern.permute.xlu1 %v465_v0  ;;  %41 = vperm.xlu0 %450, %v27_v6   ;;  %v242_v57 = vld [vmem:[%s760_s3] sm:$0xff] }
  0x14   :  { %126 = vperm.xlu1 %455, %v26_v3   ;;  %354 = vmatpush.msra.mxu2 %v283_v32  ;;  %v258_v58 = vld [vmem:[%s760_s3 + $0x80] sm:$0xff] }
  0x15   :  { %456 = vset.pattern.permute.xlu2 %v467_v4  ;;  %297 = vmatpush.msra.mxu0 %v250_v33  ;;  %v274_v59 = vld [vmem:[%s760_s3 + $0x100] sm:$0xff] }
  0x16   :  { %181 = vperm.xlu2 %456, %v171_v7   ;;  %326 = vmatpush.msra.mxu1 %v266_v34  ;;  %v23_v61 = vld [vmem:[%s762_s0] sm:$0x77] }
  0x17   :  { %355 = vmatpush.msra.mxu2 %v282_v35  ;;  %298 = vmatpush.msra.mxu0 %v249_v36  ;;  %v88_v2 = vperm.slane %v23_v61, 1  ;;  %v89_v3 = vperm.slane %v23_v61, 5  ;;  %v52_v5 = vperm.slane %v23_v61, 4  ;;  %v137_v7 = vperm.slane %v23_v61, 2 }
  0x18   :  { %327 = vmatpush.msra.mxu1 %v265_v37  ;;  %v138_v8 = vperm.slane %v23_v61, 6 }
  0x19   :  { %356 = vmatpush.msra.mxu2 %v281_v38  ;;  %299 = vmatpush.msra.mxu0 %v248_v39  ;;  %v684_v12 = vperm.slane %v89_v3, 1  ;;  %v688_v14 = vperm.slane %v52_v5, 0 }
  0x1a   :  { %328 = vmatpush.msra.mxu1 %v264_v40 }
  0x1b   :  { %461 = vset.pattern.permute.xlu0 %v466_v1  ;;  %357 = vmatpush.msra.mxu2 %v280_v41 }
  0x1c   :  { %457 = vset.pattern.permute.xlu1 %v466_v1  ;;  %85 = vperm.xlu0 %461, %v28_v11   ;;  %v51_v1 = vperm.slane %v23_v61, 0 }
  0x1d   :  { %81 = vperm.xlu1 %457, %v27_v6   ;;  %300 = vmatpush.msra.mxu0 %v247_v42 }
  0x1e   :  { %458 = vset.pattern.permute.xlu2 %v465_v0  ;;  %329 = vmatpush.msra.mxu1 %v263_v43  ;;  %v680_v10 = vperm.slane %v51_v1, 0 }
  0x1f   :  { %130 = vperm.xlu2 %458, %v27_v6   ;;  %358 = vmatpush.msra.mxu2 %v279_v44 }
  0x20   :  { %301 = vmatpush.msra.mxu0 %v246_v45  ;;  %330 = vmatpush.msra.mxu1 %v262_v46 }
  0x21   :  { %359 = vmatpush.msra.mxu2 %v278_v47 }
  0x22   :  { %302 = vmatpush.msra.mxu0 %v245_v48  ;;  %331 = vmatpush.msra.mxu1 %v261_v49 }
  0x23   :  { %360 = vmatpush.msra.mxu2 %v277_v50 }
  0x24   :  { %464 = vset.pattern.permute.xlu0 %v467_v4  ;;  %303 = vmatpush.msra.mxu0 %v244_v51 }
  0x25   :  { %459 = vset.pattern.permute.xlu1 %v467_v4  ;;  %332 = vmatpush.msra.mxu1 %v260_v52 }
  0x26   :  { %186 = vperm.xlu1 %459, %v172_v15   ;;  %361 = vmatpush.msra.mxu2 %v276_v53 }
  0x27   :  { %460 = vset.pattern.permute.xlu2 %v467_v4  ;;  %304 = vmatpush.msra.mxu0 %v243_v54 }
  0x28   :  { %46 = vperm.xlu2 %460, %v28_v11   ;;  %333 = vmatpush.msra.mxu1 %v259_v55 }
  0x29   :  { %362 = vmatpush.msra.mxu2 %v275_v56  ;;  %305 = vmatpush.msra.mxu0 %v242_v57 }
  0x2a   :  { %334 = vmatpush.msra.mxu1 %v258_v58 }
  0x2b   :  { %363 = vmatpush.msra.mxu2 %v274_v59 }
  0x2e   :  { %462 = vset.pattern.permute.xlu1 %v465_v0  ;;  %v24_v0 = vld [vmem:[%s762_s0 + $0x8] sm:$0x7] }
  0x2f   :  { %134 = vperm.xlu1 %462, %v28_v11   ;;  %v53_v6 = vperm.slane %v24_v0, 0  ;;  %v139_v9 = vperm.slane %v24_v0, 2  ;;  %v682_v11 = vperm.slane %v88_v2, 1 }
  0x30   :  { %191 = vperm.xlu2 %460, %v173_v16   ;;  %v692_v16 = vperm.slane %v137_v7, 2 }
  0x31   :  { %v690_v15 = vperm.slane %v53_v6, 0  ;;  %v696_v18 = vperm.slane %v139_v9, 2 }
  0x37   :  { %463 = vset.pattern.permute.xlu1 %v467_v4  ;;  %v90_v4 = vperm.slane %v24_v0, 1 }
  0x38   :  { %390 = vperm.xlu2 %460, %v381_v17   ;;  %v694_v17 = vperm.slane %v138_v8, 2 }
  0x39   :  { %v686_v13 = vperm.slane %v90_v4, 1 }
  0x5e   :  { %v37_v60 = vpop.permute.xlu2 %36 }
  0x5f   :  { %v63_v28 = vmul.f32 %v680_v10, %v37_v60  ;;  %v64_v35 = vmul.f32 %v688_v14, %v37_v60  ;;  %v65_v36 = vmul.f32 %v690_v15, %v37_v60 }
  0x67   :  { %v78_v19 = vpop.permute.xlu2 %77 }
  0x68   :  { %v100_v37 = vmul.f32 %v682_v11, %v78_v19  ;;  %v101_v38 = vmul.f32 %v684_v12, %v78_v19  ;;  %v102_v39 = vmul.f32 %v686_v13, %v78_v19 }
  0x6a   :  { %v112_v46 = vadd.f32 %v100_v37, %v63_v28  ;;  %v113_v47 = vadd.f32 %v101_v38, %v64_v35  ;;  %v114_v48 = vadd.f32 %v102_v39, %v65_v36 }
  0x70   :  { %v182_v50 = vpop.permute.xlu2 %181 }
  0x74   :  { %v123_v62 = vpop.permute.xlu1 %122  ;;  %v74_v63 = vpop.permute.xlu0 %73 }
  0x75   :  { %v97_v20 = vmul.f32 %v682_v11, %v74_v63  ;;  %v98_v21 = vmul.f32 %v684_v12, %v74_v63  ;;  %v99_v22 = vmul.f32 %v686_v13, %v74_v63  ;;  %v146_v29 = vmul.f32 %v692_v16, %v123_v62 }
  0x76   :  { %v147_v30 = vmul.f32 %v694_v17, %v123_v62  ;;  %v148_v31 = vmul.f32 %v696_v18, %v123_v62 }
  0x7d   :  { %v177_v23 = vpop.permute.xlu1 %176  ;;  %v32_v24 = vpop.permute.xlu0 %31 }
  0x7e   :  { %v60_v25 = vmul.f32 %v680_v10, %v32_v24  ;;  %v61_v26 = vmul.f32 %v688_v14, %v32_v24  ;;  %v62_v27 = vmul.f32 %v690_v15, %v32_v24 }
  0x80   :  { %v109_v32 = vadd.f32 %v97_v20, %v60_v25  ;;  %v110_v33 = vadd.f32 %v98_v21, %v61_v26  ;;  %v111_v34 = vadd.f32 %v99_v22, %v62_v27  ;;  %v131_v22 = vpop.permute.xlu2 %130 }
  0x81   :  { %v152_v26 = vmul.f32 %v692_v16, %v131_v22  ;;  %v153_v27 = vmul.f32 %v694_v17, %v131_v22  ;;  %v154_v28 = vmul.f32 %v696_v18, %v131_v22 }
  0x82   :  { %v158_v40 = vadd.f32 %v146_v29, %v109_v32  ;;  %v159_v41 = vadd.f32 %v147_v30, %v110_v33  ;;  %v160_v42 = vadd.f32 %v148_v31, %v111_v34 }
  0x84   :  { %v194_v43 = vadd.f32 %v177_v23, %v158_v40  ;;  %v195_v44 = vadd.f32 %v177_v23, %v159_v41  ;;  %v196_v45 = vadd.f32 %v177_v23, %v160_v42 }
  0x85   :  { %v42_v4 = vpop.permute.xlu0 %41 }
  0x86   :  { %v127_v49 = vpop.permute.xlu1 %126  ;;  %vm206_vm0 = vcmp.gt.f32.partialorder %v194_v43, 0.0  ;;  %v218_v54 = vmul.f32 0.1, %v194_v43  ;;  %vm207_vm1 = vcmp.gt.f32.partialorder %v195_v44, 0.0  ;;  %v219_v55 = vmul.f32 0.1, %v195_v44 }
  0x87   :  { %v149_v51 = vmul.f32 %v692_v16, %v127_v49  ;;  %v150_v52 = vmul.f32 %v694_v17, %v127_v49  ;;  %v151_v53 = vmul.f32 %v696_v18, %v127_v49  ;;  %vm208_vm2 = vcmp.gt.f32.partialorder %v196_v45, 0.0 }
  0x88   :  { %v220_v56 = vmul.f32 0.1, %v196_v45  ;;  %v230_v60 = vsel %vm206_vm0, %v194_v43, %v218_v54  ;;  %v231_v61 = vsel %vm207_vm1, %v195_v44, %v219_v55  ;;  %v66_v23 = vmul.f32 %v680_v10, %v42_v4  ;;  %v47_v40 = vpop.permute.xlu2 %46 }
  0x89   :  { %v161_v57 = vadd.f32 %v149_v51, %v112_v46  ;;  %v162_v58 = vadd.f32 %v150_v52, %v113_v47  ;;  %v163_v59 = vadd.f32 %v151_v53, %v114_v48  ;;  %306 = vmatmul.f32.vlgmr.msra.gmra.mxu0 %v230_v60  ;;  %335 = vmatmul.f32.vlgmr.msra.gmra.mxu1 %v231_v61 }
  0x8a   :  { %v232_v62 = vsel %vm208_vm2, %v196_v45, %v220_v56  ;;  %v67_v24 = vmul.f32 %v688_v14, %v42_v4  ;;  %v68_v25 = vmul.f32 %v690_v15, %v42_v4  ;;  %v69_v43 = vmul.f32 %v680_v10, %v47_v40 }
  0x8b   :  { %364 = vmatmul.f32.vlgmr.msra.gmra.mxu2 %v232_v62  ;;  %v197_v63 = vadd.f32 %v182_v50, %v161_v57  ;;  %v198_v0 = vadd.f32 %v182_v50, %v162_v58  ;;  %v199_v1 = vadd.f32 %v182_v50, %v163_v59  ;;  %v70_v44 = vmul.f32 %v688_v14, %v47_v40 }
  0x8c   :  { %v71_v50 = vmul.f32 %v690_v15, %v47_v40 }
  0x8d   :  { %vm209_vm3 = vcmp.gt.f32.partialorder %v197_v63, 0.0  ;;  %v221_v2 = vmul.f32 0.1, %v197_v63  ;;  %vm210_vm4 = vcmp.gt.f32.partialorder %v198_v0, 0.0  ;;  %v222_v3 = vmul.f32 0.1, %v198_v0 }
  0x8e   :  { %vm211_vm5 = vcmp.gt.f32.partialorder %v199_v1, 0.0  ;;  %v223_v5 = vmul.f32 0.1, %v199_v1  ;;  %v86_v39 = vpop.permute.xlu0 %85 }
  0x8f   :  { %v82_v6 = vpop.permute.xlu1 %81  ;;  %v233_v7 = vsel %vm209_vm3, %v197_v63, %v221_v2  ;;  %v234_v8 = vsel %vm210_vm4, %v198_v0, %v222_v3  ;;  %v106_v46 = vmul.f32 %v682_v11, %v86_v39  ;;  %v107_v47 = vmul.f32 %v684_v12, %v86_v39 }
  0x90   :  { %v103_v9 = vmul.f32 %v682_v11, %v82_v6  ;;  %v104_v19 = vmul.f32 %v684_v12, %v82_v6  ;;  %v105_v20 = vmul.f32 %v686_v13, %v82_v6  ;;  %v235_v21 = vsel %vm211_vm5, %v199_v1, %v223_v5  ;;  %v192_v15 = vpop.permute.xlu2 %191 }
  0x91   :  { %309 = vmatmul.f32.gmra.mxu0 %v233_v7  ;;  %338 = vmatmul.f32.gmra.mxu1 %v234_v8  ;;  %v108_v51 = vmul.f32 %v686_v13, %v86_v39  ;;  %v118_v53 = vadd.f32 %v106_v46, %v69_v43  ;;  %v119_v10 = vadd.f32 %v107_v47, %v70_v44 }
  0x92   :  { %v115_v29 = vadd.f32 %v103_v9, %v66_v23  ;;  %v116_v30 = vadd.f32 %v104_v19, %v67_v24  ;;  %v117_v31 = vadd.f32 %v105_v20, %v68_v25  ;;  %v380_v9 = vld [vmem:[%s761_s5] sm:$0xff]  ;;  %v382_v19 = vld [vmem:[%s761_s5 + $0x10] sm:$0xf] }
  0x93   :  { %367 = vmatmul.f32.gmra.mxu2 %v235_v21  ;;  %v120_v14 = vadd.f32 %v108_v51, %v71_v50  ;;  %385 = vperm.xlu1 %463, %v380_v9  }
  0x94   :  { %v164_v32 = vadd.f32 %v152_v26, %v115_v29  ;;  %v165_v33 = vadd.f32 %v153_v27, %v116_v30  ;;  %v166_v34 = vadd.f32 %v154_v28, %v117_v31  ;;  %395 = vperm.xlu0 %464, %v382_v19   ;;  %v377_v31 = vld [vmem:[%s763_s4] sm:$0xff] }
  0x98   :  { %v187_v35 = vpop.permute.xlu1 %186 }
  0x99   :  { %v200_v36 = vadd.f32 %v187_v35, %v164_v32  ;;  %v201_v37 = vadd.f32 %v187_v35, %v165_v33  ;;  %v202_v38 = vadd.f32 %v187_v35, %v166_v34  ;;  %v378_v32 = vld [vmem:[%s763_s4 + $0x8] sm:$0xff]  ;;  %v379_v33 = vld [vmem:[%s763_s4 + $0x10] sm:$0xf] }
  0x9b   :  { %vm212_vm6 = vcmp.gt.f32.partialorder %v200_v36, 0.0  ;;  %v224_v41 = vmul.f32 0.1, %v200_v36  ;;  %vm213_vm7 = vcmp.gt.f32.partialorder %v201_v37, 0.0  ;;  %v225_v42 = vmul.f32 0.1, %v201_v37 }
  0x9c   :  { %vm214_vm8 = vcmp.gt.f32.partialorder %v202_v38, 0.0  ;;  %v226_v45 = vmul.f32 0.1, %v202_v38 }
  0x9d   :  { %v236_v48 = vsel %vm212_vm6, %v200_v36, %v224_v41  ;;  %v237_v49 = vsel %vm213_vm7, %v201_v37, %v225_v42  ;;  %v391_v37 = vpop.permute.xlu2 %390 }
  0x9e   :  { %312 = vmatmul.f32.gmra.mxu0 %v236_v48  ;;  %341 = vmatmul.f32.gmra.mxu1 %v237_v49  ;;  %v238_v52 = vsel %vm214_vm8, %v202_v38, %v226_v45 }
  0x9f   :  { %370 = vmatmul.f32.gmra.mxu2 %v238_v52 }
  0xa1   :  { %v135_v54 = vpop.permute.xlu1 %134 }
  0xa2   :  { %v155_v55 = vmul.f32 %v692_v16, %v135_v54  ;;  %v156_v11 = vmul.f32 %v694_v17, %v135_v54  ;;  %v157_v12 = vmul.f32 %v696_v18, %v135_v54 }
  0xa4   :  { %v167_v56 = vadd.f32 %v155_v55, %v118_v53  ;;  %v168_v57 = vadd.f32 %v156_v11, %v119_v10  ;;  %v169_v58 = vadd.f32 %v157_v12, %v120_v14 }
  0xa6   :  { %v203_v59 = vadd.f32 %v192_v15, %v167_v56  ;;  %v204_v13 = vadd.f32 %v192_v15, %v168_v57  ;;  %v205_v60 = vadd.f32 %v192_v15, %v169_v58 }
  0xa8   :  { %vm215_vm9 = vcmp.gt.f32.partialorder %v203_v59, 0.0  ;;  %v227_v61 = vmul.f32 0.1, %v203_v59  ;;  %vm216_vm10 = vcmp.gt.f32.partialorder %v204_v13, 0.0  ;;  %v228_v62 = vmul.f32 0.1, %v204_v13 }
  0xa9   :  { %vm217_vm11 = vcmp.gt.f32.partialorder %v205_v60, 0.0  ;;  %v229_v63 = vmul.f32 0.1, %v205_v60 }
  0xaa   :  { %v239_v0 = vsel %vm215_vm9, %v203_v59, %v227_v61  ;;  %v240_v1 = vsel %vm216_vm10, %v204_v13, %v228_v62 }
  0xab   :  { %315 = vmatmul.f32.gmra.mxu0 %v239_v0  ;;  %344 = vmatmul.f32.gmra.mxu1 %v240_v1  ;;  %v241_v16 = vsel %vm217_vm11, %v205_v60, %v229_v63 }
  0xac   :  { %373 = vmatmul.f32.gmra.mxu2 %v241_v16 }
 0x105   :  { %v386_v34 = vpop.permute.xlu1 %385 }
 0x106   :  { %v307_v17 = vpop.f32.mrf.mxu0  ;;  %v336_v18 = vpop.f32.mrf.mxu1 }
 0x107   :  { %v337_v28 = vadd.f32 %v336_v18, %v307_v17  ;;  %v396_v40 = vpop.permute.xlu0 %395 }
 0x10e   :  { %v365_v2 = vpop.f32.mrf.mxu2  ;;  %v310_v3 = vpop.f32.mrf.mxu0 }
 0x10f   :  { %v339_v4 = vpop.f32.mrf.mxu1  ;;  %v366_v30 = vadd.f32 %v365_v2, %v337_v28 }
 0x110   :  { %v340_v26 = vadd.f32 %v339_v4, %v310_v3 }
 0x116   :  { %v368_v5 = vpop.f32.mrf.mxu2 }
 0x117   :  { %v369_v29 = vadd.f32 %v368_v5, %v340_v26 }
 0x11b   :  { %v313_v6 = vpop.f32.mrf.mxu0  ;;  %v342_v7 = vpop.f32.mrf.mxu1 }
 0x11c   :  { %v343_v24 = vadd.f32 %v342_v7, %v313_v6 }
 0x122   :  { %v371_v8 = vpop.f32.mrf.mxu2 }
 0x123   :  { %v372_v27 = vadd.f32 %v371_v8, %v343_v24 }
 0x128   :  { %v316_v20 = vpop.f32.mrf.mxu0  ;;  %v345_v21 = vpop.f32.mrf.mxu1 }
 0x129   :  { %v346_v22 = vadd.f32 %v345_v21, %v316_v20 }
 0x12f   :  { %v374_v23 = vpop.f32.mrf.mxu2 }
 0x130   :  { %v375_v25 = vadd.f32 %v374_v23, %v346_v22 }
 0x132   :  { %420 = vmatpush.msra.mxu3 %v375_v25 }
 0x134   :  { %421 = vmatpush.msra.mxu3 %v372_v27 }
 0x136   :  { %422 = vmatpush.msra.mxu3 %v369_v29 }
 0x138   :  { %423 = vmatpush.msra.mxu3 %v366_v30 }
 0x139   :  { %443 = vmatmul.msk.f32.vlgmr.msra.gmra.mxu3 %vm398_vm12, %v377_v31 }
 0x141   :  { %444 = vmatmul.msk.f32.gmra.mxu3 %vm398_vm12, %v378_v32 }
 0x149   :  { %445 = vmatmul.msk.f32.gmra.mxu3 %vm398_vm12, %v379_v33 }
 0x1bc   :  { %v425_v35 = vpop.f32.mrf.mxu3 }
 0x1bd   :  { %v426_v36 = vadd.f32 %v425_v35, %v386_v34 }
 0x1bf   :  { %435 = vst.msk [vmem:[%s764_s6] sm:$0xff] %vm434_vm13, %v426_v36 }
 0x1c4   :  { %v428_v38 = vpop.f32.mrf.mxu3 }
 0x1c5   :  { %v429_v39 = vadd.f32 %v428_v38, %v391_v37 }
 0x1c7   :  { %436 = vst.msk [vmem:[%s764_s6 + $0x8] sm:$0xff] %vm434_vm13, %v429_v39 }
 0x1cc   :  { %v431_v41 = vpop.f32.mrf.mxu3 }
 0x1cd   :  { %v432_v42 = vadd.f32 %v431_v41, %v396_v40 }
 0x1cf   :  { %438 = vst.msk [vmem:[%s764_s6 + $0x10] sm:$0xf] %vm437_vm14, %v432_v42 }

</bundles_post_ra>
